<compile_context>
chip_gen: v5e
topology: v5e:2x2
jax: 0.10.0
libtpu: 0.0.40
codegen_flags: <defaults>
</compile_context>

<pallas_src>
import functools
import numpy as np
import jax
import jax.numpy as jnp
from jax.experimental import pallas as pl
from jax.experimental.pallas import tpu as pltpu


# --------------------------------------------------------------------------
# DDPM beta / alpha schedules (pure JAX glue, same math as the torch version)
# --------------------------------------------------------------------------
def ddpm_schedules(beta1, beta2, T):
    assert beta1 < beta2 < 1.0
    beta_t = (beta2 - beta1) * jnp.arange(0, T + 1, dtype=jnp.float32) / T + beta1
    sqrt_beta_t = jnp.sqrt(beta_t)
    alpha_t = 1.0 - beta_t
    log_alpha_t = jnp.log(alpha_t)
    alphabar_t = jnp.exp(jnp.cumsum(log_alpha_t))
    sqrtab = jnp.sqrt(alphabar_t)
    oneover_sqrta = 1.0 / jnp.sqrt(alpha_t)
    sqrtmab = jnp.sqrt(1.0 - alphabar_t)
    mab_over_sqrtmab = (1.0 - alpha_t) / sqrtmab
    return {
        "alpha_t": alpha_t,
        "oneover_sqrta": oneover_sqrta,
        "sqrt_beta_t": sqrt_beta_t,
        "alphabar_t": alphabar_t,
        "sqrtab": sqrtab,
        "sqrtmab": sqrtmab,
        "mab_over_sqrtmab": mab_over_sqrtmab,
    }


# --------------------------------------------------------------------------
# Pallas kernel: whole batch in one step.
#   x / noise : (B, C, HW)  — HW on lanes (lane-dense), C on sublanes
#   scal      : SMEM (B, 2) — [sqrtab[t], sqrtmab[t]] per sample
#   cond      : (B, Hd, 1)  — precomputed conditioning, broadcast over lanes
#   w1t (Hd, C), w2t (C, Hd), b2t (C, 1)
#   loss      : SMEM (1, 1) scalar output (mean squared error)
# --------------------------------------------------------------------------
def _ddpm_kernel(scal_ref, x_ref, noise_ref, cond_ref,
                 w1t_ref, w2t_ref, b2t_ref, loss_ref,
                 *, batch, total_elems):
    w1t = w1t_ref[...]      # (Hd, C)
    w2t = w2t_ref[...]      # (C, Hd)
    b2t = b2t_ref[...]      # (C, 1)

    acc = jnp.zeros((), jnp.float32)
    # Static fully-unrolled loop over the (tiny) batch; per-sample scalars
    # come from SMEM, all vector work is lane-dense over HW.
    for b in range(batch):
        sab = scal_ref[b, 0]
        smab = scal_ref[b, 1]
        xb = x_ref[b]        # (C, HW)
        nb = noise_ref[b]    # (C, HW)

        # forward diffusion: x_t = sqrtab[t] * x + sqrtmab[t] * noise
        x_t = sab * xb + smab * nb

        # pointwise conditioned MLP (NOTE: K=C is tiny; a VPU outer-product
        # accumulation is an alternative to the MXU path at these sizes)
        h = jnp.maximum(
            jnp.dot(w1t, x_t, preferred_element_type=jnp.float32)
            + cond_ref[b], 0.0)                                    # (Hd, HW)
        eps = jnp.dot(w2t, h, preferred_element_type=jnp.float32) + b2t  # (C, HW)

        diff = nb - eps
        acc = acc + jnp.sum(diff * diff)

    loss_ref[0, 0] = acc / total_elems


def ddpm_forward_loss_pallas(x_chw, noise_chw, scal, cond, params):
    """x_chw, noise_chw: (B, C, HW); scal: (B, 2); cond: (B, Hd)."""
    B, C, HW = x_chw.shape
    Hd = params["w1"].shape[1]
    total = float(B * C * HW)

    # Transpose the small weights so the big intermediates are (Hd, HW)/(C, HW)
    # with HW on lanes.
    w1t = params["w1"].T                 # (Hd, C)
    w2t = params["w2"].T                 # (C, Hd)
    b2t = params["b2"].T                 # (C, 1)
    cond_t = cond[:, :, None]            # (B, Hd, 1)

    kernel = functools.partial(_ddpm_kernel, batch=B, total_elems=total)

    flops = int(2 * B * HW * (Hd * C + C * Hd) + 8 * B * C * HW)
    bytes_accessed = int(4 * (2 * B * C * HW + Hd * C + C * Hd + C
                              + B * Hd + 2 * B) + 4)

    loss = pl.pallas_call(
        kernel,
        out_shape=jax.ShapeDtypeStruct((1, 1), jnp.float32),
        in_specs=[
            pl.BlockSpec(memory_space=pltpu.MemorySpace.SMEM),   # scal
            pl.BlockSpec(memory_space=pltpu.MemorySpace.VMEM),   # x
            pl.BlockSpec(memory_space=pltpu.MemorySpace.VMEM),   # noise
            pl.BlockSpec(memory_space=pltpu.MemorySpace.VMEM),   # cond
            pl.BlockSpec(memory_space=pltpu.MemorySpace.VMEM),   # w1t
            pl.BlockSpec(memory_space=pltpu.MemorySpace.VMEM),   # w2t
            pl.BlockSpec(memory_space=pltpu.MemorySpace.VMEM),   # b2t
        ],
        out_specs=pl.BlockSpec(memory_space=pltpu.MemorySpace.SMEM),
        cost_estimate=pl.CostEstimate(
            flops=flops, transcendentals=0, bytes_accessed=bytes_accessed),
    )(scal, x_chw, noise_chw, cond_t, w1t, w2t, b2t)
    return loss[0, 0]


# --------------------------------------------------------------------------
# DDPM wrapper (JAX glue: RNG sampling, schedule gather, conditioning hoist)
# --------------------------------------------------------------------------
class DDPMPallas:
    def __init__(self, params, betas, n_T, drop_prob=0.1):
        self.params = params
        self.n_T = n_T
        self.drop_prob = drop_prob
        self.sched = ddpm_schedules(betas[0], betas[1], n_T)
        self.n_classes = params["wc"].shape[0]

    def forward(self, x, cc, key):
        # x: (B, C, H, W) float32 (NCHW like PyTorch); cc: (B,) int32
        B, C, H, W = x.shape
        k_t, k_n, k_m = jax.random.split(key, 3)
        _ts = jax.random.randint(k_t, (B,), 1, self.n_T + 1)
        noise = jax.random.normal(k_n, x.shape, dtype=jnp.float32)
        context_mask = jax.random.bernoulli(
            k_m, self.drop_prob, cc.shape).astype(jnp.float32)

        sab_t = self.sched["sqrtab"][_ts]
        smab_t = self.sched["sqrtmab"][_ts]
        tnorm = _ts.astype(jnp.float32) / self.n_T
        scal = jnp.stack([sab_t, smab_t], axis=1)                 # (B, 2)

        cvec = (jax.nn.one_hot(cc, self.n_classes, dtype=jnp.float32)
                * (1.0 - context_mask)[:, None])                  # (B, n_cls)

        # conditioning hoisted out of the kernel (degenerate tiny matmul)
        cond = (cvec @ self.params["wc"]
                + tnorm[:, None] * self.params["wt"]
                + self.params["b1"])                              # (B, Hd)

        # keep channel-major (NCHW) layout; just flatten spatial -> (B, C, HW)
        x_chw = x.reshape(B, C, H * W)
        n_chw = noise.reshape(B, C, H * W)

        loss = ddpm_forward_loss_pallas(x_chw, n_chw, scal, cond, self.params)
        aux = (x_chw, n_chw, scal, cvec, tnorm)
        return loss, aux

    # TODO(synk): DDPM.sample() (ancestral sampling loop with cfg guidance) is
    # host-side python control flow; not implemented as a kernel here.


# --------------------------------------------------------------------------
# Pure-JAX reference of the same forward for correctness checking
# --------------------------------------------------------------------------
def reference_loss(x_chw, n_chw, scal, cvec, tnorm, params):
    sab = scal[:, 0][:, None, None]
    smab = scal[:, 1][:, None, None]
    x_t = sab * x_chw + smab * n_chw                               # (B, C, HW)
    cond = cvec @ params["wc"] + tnorm[:, None] * params["wt"] + params["b1"]
    h = jnp.maximum(
        jnp.einsum("ch,bcs->bhs", params["w1"], x_t) + cond[:, :, None], 0.0)
    eps = jnp.einsum("hc,bhs->bcs", params["w2"], h) + params["b2"].T[None, :, :]
    return jnp.mean((n_chw - eps) ** 2)


# --------------------------------------------------------------------------
if __name__ == "__main__":
    B, C, H, W = 2, 4, 16, 16
    n_classes, hidden = 3, 32
    n_T = 400
    betas = (1e-4, 0.02)

    key = jax.random.PRNGKey(0)
    k_x, k_c, k_p, k_fwd = jax.random.split(key, 4)
    kw = jax.random.split(k_p, 6)

    params = {
        "w1": 0.1 * jax.random.normal(kw[0], (C, hidden), jnp.float32),
        "wc": 0.1 * jax.random.normal(kw[1], (n_classes, hidden), jnp.float32),
        "wt": 0.1 * jax.random.normal(kw[2], (1, hidden), jnp.float32),
        "b1": 0.01 * jax.random.normal(kw[3], (1, hidden), jnp.float32),
        "w2": 0.1 * jax.random.normal(kw[4], (hidden, C), jnp.float32),
        "b2": 0.01 * jax.random.normal(kw[5], (1, C), jnp.float32),
    }

    x = jax.random.normal(k_x, (B, C, H, W), jnp.float32)
    cc = jax.random.randint(k_c, (B,), 0, n_classes)

    ddpm = DDPMPallas(params, betas, n_T, drop_prob=0.1)
    loss, aux = ddpm.forward(x, cc, k_fwd)
    loss = jax.block_until_ready(loss)

    ref = jax.block_until_ready(reference_loss(*aux, params))
    np.testing.assert_allclose(np.asarray(loss), np.asarray(ref),
                               rtol=1e-5, atol=1e-5)
    print("KERNEL_OK")
</pallas_src>

<mosaic_0001>
module attributes {stable_mosaic.version = 11 : i64} {
  func.func @_ddpm_kernel(%arg0: memref<2x2xf32, #tpu.memory_space<smem>>, %arg1: memref<2x4x256xf32, #tpu.memory_space<vmem>>, %arg2: memref<2x4x256xf32, #tpu.memory_space<vmem>>, %arg3: memref<2x32x1xf32, #tpu.memory_space<vmem>>, %arg4: memref<32x4xf32, #tpu.memory_space<vmem>>, %arg5: memref<4x32xf32, #tpu.memory_space<vmem>>, %arg6: memref<4x1xf32, #tpu.memory_space<vmem>>, %arg7: memref<1x1xf32, #tpu.memory_space<smem>>) attributes {dimension_semantics = [], scalar_prefetch = 0 : i64, scratch_operands = 0 : i64, tpu.core_type = #tpu.core_type<tc>} {
    %c0 = arith.constant 0 : index
    %c0_0 = arith.constant 0 : index
    %0 = vector.load %arg4[%c0, %c0_0] : memref<32x4xf32, #tpu.memory_space<vmem>>, vector<32x4xf32>
    %c0_1 = arith.constant 0 : index
    %c0_2 = arith.constant 0 : index
    %1 = vector.load %arg5[%c0_1, %c0_2] : memref<4x32xf32, #tpu.memory_space<vmem>>, vector<4x32xf32>
    %c0_3 = arith.constant 0 : index
    %c0_4 = arith.constant 0 : index
    %2 = vector.load %arg6[%c0_3, %c0_4] : memref<4x1xf32, #tpu.memory_space<vmem>>, vector<4x1xf32>
    %c0_5 = arith.constant 0 : index
    %c0_6 = arith.constant 0 : index
    %3 = memref.load %arg0[%c0_5, %c0_6] : memref<2x2xf32, #tpu.memory_space<smem>>
    %c0_7 = arith.constant 0 : index
    %c1 = arith.constant 1 : index
    %4 = memref.load %arg0[%c0_7, %c1] : memref<2x2xf32, #tpu.memory_space<smem>>
    %c0_8 = arith.constant 0 : index
    %c0_9 = arith.constant 0 : index
    %c0_10 = arith.constant 0 : index
    %5 = vector.load %arg1[%c0_8, %c0_9, %c0_10] : memref<2x4x256xf32, #tpu.memory_space<vmem>>, vector<1x4x256xf32>
    %6 = vector.shape_cast %5 : vector<1x4x256xf32> to vector<4x256xf32>
    %c0_11 = arith.constant 0 : index
    %c0_12 = arith.constant 0 : index
    %c0_13 = arith.constant 0 : index
    %7 = vector.load %arg2[%c0_11, %c0_12, %c0_13] : memref<2x4x256xf32, #tpu.memory_space<vmem>>, vector<1x4x256xf32>
    %8 = vector.shape_cast %7 : vector<1x4x256xf32> to vector<4x256xf32>
    %9 = vector.broadcast %3 : f32 to vector<4x256xf32>
    %10 = arith.mulf %9, %6 : vector<4x256xf32>
    %11 = vector.broadcast %4 : f32 to vector<4x256xf32>
    %12 = arith.mulf %11, %8 : vector<4x256xf32>
    %13 = arith.addf %10, %12 : vector<4x256xf32>
    %cst = arith.constant dense<0.000000e+00> : vector<32x256xf32>
    %14 = tpu.matmul %0, %13, %cst {dimension_numbers = #tpu.dot_dimension_numbers<[1], [0], [0], [1], [0, 0, 1, 1], [], []>} : vector<32x4xf32>, vector<4x256xf32>, vector<32x256xf32> -> vector<32x256xf32>
    %c0_14 = arith.constant 0 : index
    %c0_15 = arith.constant 0 : index
    %c0_16 = arith.constant 0 : index
    %15 = vector.load %arg3[%c0_14, %c0_15, %c0_16] : memref<2x32x1xf32, #tpu.memory_space<vmem>>, vector<1x32x1xf32>
    %16 = vector.shape_cast %15 : vector<1x32x1xf32> to vector<32x1xf32>
    %17 = vector.broadcast %16 : vector<32x1xf32> to vector<32x256xf32>
    %18 = arith.addf %14, %17 : vector<32x256xf32>
    %cst_17 = arith.constant 0.000000e+00 : f32
    %19 = vector.broadcast %cst_17 : f32 to vector<32x256xf32>
    %20 = arith.maximumf %18, %19 : vector<32x256xf32>
    %cst_18 = arith.constant dense<0.000000e+00> : vector<4x256xf32>
    %21 = tpu.matmul %1, %20, %cst_18 {dimension_numbers = #tpu.dot_dimension_numbers<[1], [0], [0], [1], [0, 0, 1, 1], [], []>} : vector<4x32xf32>, vector<32x256xf32>, vector<4x256xf32> -> vector<4x256xf32>
    %22 = vector.broadcast %2 : vector<4x1xf32> to vector<4x256xf32>
    %23 = arith.addf %21, %22 : vector<4x256xf32>
    %24 = arith.subf %8, %23 : vector<4x256xf32>
    %25 = arith.mulf %24, %24 : vector<4x256xf32>
    %26 = vector.shape_cast %25 : vector<4x256xf32> to vector<1x4x256xf32>
    %cst_19 = arith.constant dense<0.000000e+00> : vector<1xf32>
    %27 = vector.multi_reduction <add>, %26, %cst_19 [1, 2] : vector<1x4x256xf32> to vector<1xf32>
    %28 = vector.shape_cast %27 : vector<1xf32> to vector<1x1x1xf32>
    %29 = vector.extract %28[0, 0, 0] : f32 from vector<1x1x1xf32>
    %cst_20 = arith.constant 0.000000e+00 : f32
    %30 = arith.addf %cst_20, %29 : f32
    %c1_21 = arith.constant 1 : index
    %c0_22 = arith.constant 0 : index
    %31 = memref.load %arg0[%c1_21, %c0_22] : memref<2x2xf32, #tpu.memory_space<smem>>
    %c1_23 = arith.constant 1 : index
    %c1_24 = arith.constant 1 : index
    %32 = memref.load %arg0[%c1_23, %c1_24] : memref<2x2xf32, #tpu.memory_space<smem>>
    %c1_25 = arith.constant 1 : index
    %c0_26 = arith.constant 0 : index
    %c0_27 = arith.constant 0 : index
    %33 = vector.load %arg1[%c1_25, %c0_26, %c0_27] : memref<2x4x256xf32, #tpu.memory_space<vmem>>, vector<1x4x256xf32>
    %34 = vector.shape_cast %33 : vector<1x4x256xf32> to vector<4x256xf32>
    %c1_28 = arith.constant 1 : index
    %c0_29 = arith.constant 0 : index
    %c0_30 = arith.constant 0 : index
    %35 = vector.load %arg2[%c1_28, %c0_29, %c0_30] : memref<2x4x256xf32, #tpu.memory_space<vmem>>, vector<1x4x256xf32>
    %36 = vector.shape_cast %35 : vector<1x4x256xf32> to vector<4x256xf32>
    %37 = vector.broadcast %31 : f32 to vector<4x256xf32>
    %38 = arith.mulf %37, %34 : vector<4x256xf32>
    %39 = vector.broadcast %32 : f32 to vector<4x256xf32>
    %40 = arith.mulf %39, %36 : vector<4x256xf32>
    %41 = arith.addf %38, %40 : vector<4x256xf32>
    %cst_31 = arith.constant dense<0.000000e+00> : vector<32x256xf32>
    %42 = tpu.matmul %0, %41, %cst_31 {dimension_numbers = #tpu.dot_dimension_numbers<[1], [0], [0], [1], [0, 0, 1, 1], [], []>} : vector<32x4xf32>, vector<4x256xf32>, vector<32x256xf32> -> vector<32x256xf32>
    %c1_32 = arith.constant 1 : index
    %c0_33 = arith.constant 0 : index
    %c0_34 = arith.constant 0 : index
    %43 = vector.load %arg3[%c1_32, %c0_33, %c0_34] : memref<2x32x1xf32, #tpu.memory_space<vmem>>, vector<1x32x1xf32>
    %44 = vector.shape_cast %43 : vector<1x32x1xf32> to vector<32x1xf32>
    %45 = vector.broadcast %44 : vector<32x1xf32> to vector<32x256xf32>
    %46 = arith.addf %42, %45 : vector<32x256xf32>
    %cst_35 = arith.constant 0.000000e+00 : f32
    %47 = vector.broadcast %cst_35 : f32 to vector<32x256xf32>
    %48 = arith.maximumf %46, %47 : vector<32x256xf32>
    %cst_36 = arith.constant dense<0.000000e+00> : vector<4x256xf32>
    %49 = tpu.matmul %1, %48, %cst_36 {dimension_numbers = #tpu.dot_dimension_numbers<[1], [0], [0], [1], [0, 0, 1, 1], [], []>} : vector<4x32xf32>, vector<32x256xf32>, vector<4x256xf32> -> vector<4x256xf32>
    %50 = vector.broadcast %2 : vector<4x1xf32> to vector<4x256xf32>
    %51 = arith.addf %49, %50 : vector<4x256xf32>
    %52 = arith.subf %36, %51 : vector<4x256xf32>
    %53 = arith.mulf %52, %52 : vector<4x256xf32>
    %54 = vector.shape_cast %53 : vector<4x256xf32> to vector<1x4x256xf32>
    %cst_37 = arith.constant dense<0.000000e+00> : vector<1xf32>
    %55 = vector.multi_reduction <add>, %54, %cst_37 [1, 2] : vector<1x4x256xf32> to vector<1xf32>
    %56 = vector.shape_cast %55 : vector<1xf32> to vector<1x1x1xf32>
    %57 = vector.extract %56[0, 0, 0] : f32 from vector<1x1x1xf32>
    %58 = arith.addf %30, %57 : f32
    %cst_38 = arith.constant 2.048000e+03 : f32
    %59 = arith.divf %58, %cst_38 : f32
    %c0_39 = arith.constant 0 : index
    %c0_40 = arith.constant 0 : index
    %60 = memref.load %arg7[%c0_39, %c0_40] : memref<1x1xf32, #tpu.memory_space<smem>>
    memref.store %59, %arg7[%c0_39, %c0_40] : memref<1x1xf32, #tpu.memory_space<smem>>
    return
  }
}

</mosaic_0001>

<bundles_post_ra>
// kernel: tpu_custom_call.1
= control target key start
LH: loop header
LB: loop body
LE: loop exit
PB: predicated region body
PF: predicated region fallthrough
CT: control target
= control target key end

     0   :  { %12 = vsyncpa [#allocation4], 0  ;;  %s699_s0 = inlined_call_operand.vmem [shape: f32[2,2], index: 0, kind: input, shape index: {}]   ;;  %s700_s1 = inlined_call_operand.vmem [shape: f32[2,4,256], index: 1, kind: input, shape index: {}]   ;;  %s701_s2 = inlined_call_operand.vmem [shape: f32[2,4,256], index: 2, kind: input, shape index: {}]   ;;  %s702_s3 = inlined_call_operand.vmem [shape: f32[2,32,1], index: 3, kind: input, shape index: {}]   ;;  %s703_s4 = inlined_call_operand.vmem [shape: f32[32,4], index: 4, kind: input, shape index: {}]   ;;  %s704_s5 = inlined_call_operand.vmem [shape: f32[4,32], index: 5, kind: input, shape index: {}]   ;;  %s705_s6 = inlined_call_operand.vmem [shape: f32[4,1], index: 6, kind: input, shape index: {}]   ;;  %s706_s7 = inlined_call_operand.hbm [shape: f32[1,1], index: 7, kind: output, shape index: {}]  }
   0x1   :  { %13 = vsyncpa [#allocation3], 0  ;;  %s19_s26 = sshll.u32 %s699_s0, 4  ;;  %s521_s27 = smov [#allocation2]   ;;  %s20_s26 = int_to_ptr.vmem [resolvable:$true] %s19_s26 }
   0x2   :  { %22 = dma.vmem_to_smem %s20_s26, 32, %s521_s27, [#allocation4]  }
   0x3   :  { %517 = dma.done.wait [#allocation4], 32  }
   0x4   :  { %518 = vsyncadd [#allocation4], 4294967264 }
   0x5   :  { %39 = sfence }
   0x6   :  { %s46_s28 = sld [smem:[#allocation2]]  ;;  %v56_v0 = vld [vmem:[%s702_s3 + $0x8] sm:$0xff]  ;;  %v522_v1 = vmov 0   ;;  %v58_v2 = vld [vmem:[%s702_s3 + $0x18] sm:$0xff]  ;;  %v48_v3 = vld [vmem:[%s700_s1] sm:$0xff]  ;;  %vm96_vm0 = vcmask 1043456  }
   0x7   :  { %s445_s29 = sld [smem:[#allocation2 + $0x1]]  ;;  %489 = vset.pattern.permute.xlu1 %v522_v1  ;;  %488 = vset.pattern.permute.xlu0 %v522_v1  ;;  %v580_v4 = vld [vmem:[%s701_s2] sm:$0xff]  ;;  %v57_v10 = vld [vmem:[%s702_s3 + $0x10] sm:$0xff]  ;;  %v463_v13 = vld [vmem:[%s702_s3 + $0x28] sm:$0xff]  ;;  %vm83_vm1 = vcmask 31744   ;;  %vm172_vm2 = vcmask 261120  }
   0x8   :  { %66 = vperm.xlu1 %489, %v56_v0   ;;  %76 = vperm.xlu0 %488, %v58_v2   ;;  %v55_v9 = vld [vmem:[%s702_s3] sm:$0xff]  ;;  %v464_v12 = vld [vmem:[%s702_s3 + $0x30] sm:$0xff]  ;;  %v609_v17 = vld [vmem:[%s703_s4 + $0x8] sm:$0xff]  ;;  %s458_s11 = sld [smem:[#allocation2 + $0x80]]  ;;  %s434_s17 = sshll.u32 %s706_s7, 4  ;;  %s435_s17 = int_to_ptr.hbm [resolvable:$true] %s434_s17 }
   0x9   :  { %490 = vset.pattern.permute.xlu2 %v522_v1  ;;  %v598_v14 = vld [vmem:[%s703_s4] sm:$0xff]  ;;  %v618_v18 = vld [vmem:[%s703_s4 + $0x10] sm:$0xff]  ;;  %v627_v19 = vld [vmem:[%s703_s4 + $0x18] sm:$0xff]  ;;  %s459_s12 = sld [smem:[#allocation2 + $0x81]]  ;;  %s524_s22 = smov [#allocation5]  }
   0xa   :  { %v45_v22 = vld [vmem:[%s705_s6] sm:$0xf]  ;;  %v465_v25 = vld [vmem:[%s702_s3 + $0x38] sm:$0xff]  ;;  %v460_v60 = vld [vmem:[%s700_s1 + $0x8] sm:$0xff] }
   0xb   :  { %169 = vperm.xlu2 %490, %v45_v22   ;;  %v462_v30 = vld [vmem:[%s702_s3 + $0x20] sm:$0xff]  ;;  %v663_v61 = vld [vmem:[%s701_s2 + $0x8] sm:$0xff] }
   0xc   :  { %v50_v5 = vstv %s46_s28  ;;  %v645_v51 = vld [vmem:[%s704_s5] sm:$0xf] }
   0xd   :  { %v51_v6 = vmul.f32 %v50_v5, %v48_v3  ;;  %v52_v7 = vstv %s445_s29 }
   0xe   :  { %v53_v8 = vmul.f32 %v52_v7, %v580_v4  ;;  %v248_v62 = vstv %s458_s11 }
   0xf   :  { %v250_v63 = vstv %s459_s12  ;;  %v249_v1 = vmul.f32 %v460_v60, %v248_v62  ;;  %v523_v60 = vmov 2048.0  }
  0x10   :  { %v54_v11 = vadd.f32 %v53_v8, %v51_v6  ;;  %61 = vperm.xlu1 %489, %v55_v9   ;;  %71 = vperm.xlu0 %488, %v57_v10   ;;  %v251_v2 = vmul.f32 %v663_v61, %v250_v63  ;;  %491 = vrcp.f32 %v523_v60 }
  0x12   :  { %80 = vst [vmem:[#allocation1] ss:$2 sm:$0xff] %v54_v11  ;;  %v252_v3 = vadd.f32 %v251_v2, %v249_v1 }
  0x13   :  { %275 = vperm.xlu2 %490, %v465_v25  }
  0x16   :  { %v492_v62 = vpop.eup %491 }
  0x17   :  { %v419_v63 = vmul.f32 2048.0, %v492_v62  ;;  %vm423_vm3 = vweird.f32 %v492_v62 }
  0x18   :  { %270 = vperm.xlu0 %488, %v464_v12   ;;  %265 = vperm.xlu1 %489, %v463_v13  }
  0x19   :  { %v81_v15 = vld.sshfl [vmem:[#allocation1] sm:$0xff pattern:$0x75316420]  ;;  %v82_v16 = vld.sshfl [vmem:[#allocation1 + $0x8] sm:$0xff pattern:$0x75316420] }
  0x1a   :  { %446 = vmatpush.msk.msra.mxu0 %vm96_vm0, %v81_v15  ;;  %451 = vmatpush.msk.msra.mxu1 %vm96_vm0, %v82_v16 }
  0x1b   :  { %447 = vmatmul.msk.f32.vlgmr.msra.gmra.mxu0 %vm83_vm1, %v598_v14  ;;  %452 = vmatmul.msk.f32.vlgmr.msra.gmra.mxu1 %vm83_vm1, %v598_v14 }
  0x1c   :  { %260 = vperm.xlu2 %490, %v462_v30  }
  0x23   :  { %448 = vmatmul.msk.f32.gmra.mxu0 %vm83_vm1, %v609_v17  ;;  %453 = vmatmul.msk.f32.gmra.mxu1 %vm83_vm1, %v609_v17 }
  0x2b   :  { %449 = vmatmul.msk.f32.gmra.mxu0 %vm83_vm1, %v618_v18  ;;  %454 = vmatmul.msk.f32.gmra.mxu1 %vm83_vm1, %v618_v18 }
  0x33   :  { %450 = vmatmul.msk.f32.gmra.mxu0 %vm83_vm1, %v627_v19  ;;  %455 = vmatmul.msk.f32.gmra.mxu1 %vm83_vm1, %v627_v19 }
  0x65   :  { %v651_v52 = vpop.permute.xlu2 %169 }
  0x7a   :  { %v77_v26 = vpop.permute.xlu0 %76  ;;  %v67_v27 = vpop.permute.xlu1 %66 }
  0x82   :  { %v72_v31 = vpop.permute.xlu0 %71  ;;  %v62_v38 = vpop.permute.xlu1 %61 }
  0x8a   :  { %v271_v11 = vpop.permute.xlu0 %270 }
  0x98   :  { %v118_v20 = vpop.f32.mrf.mxu0  ;;  %v147_v21 = vpop.f32.mrf.mxu1 }
  0x99   :  { %v119_v43 = vadd.f32 %v118_v20, %v62_v38  ;;  %v148_v44 = vadd.f32 %v147_v21, %v62_v38 }
  0x9b   :  { %v159_v49 = vmax.f32 %v119_v43, 0.0  ;;  %v160_v50 = vmax.f32 %v148_v44, 0.0 }
  0xa0   :  { %v121_v23 = vpop.f32.mrf.mxu0  ;;  %v150_v24 = vpop.f32.mrf.mxu1 }
  0xa1   :  { %v122_v39 = vadd.f32 %v121_v23, %v67_v27  ;;  %v151_v40 = vadd.f32 %v150_v24, %v67_v27 }
  0xa3   :  { %v161_v47 = vmax.f32 %v122_v39, 0.0  ;;  %v162_v48 = vmax.f32 %v151_v40, 0.0 }
  0xa8   :  { %v124_v28 = vpop.f32.mrf.mxu0  ;;  %v153_v29 = vpop.f32.mrf.mxu1 }
  0xa9   :  { %v125_v34 = vadd.f32 %v124_v28, %v72_v31  ;;  %v154_v35 = vadd.f32 %v153_v29, %v72_v31 }
  0xab   :  { %v163_v45 = vmax.f32 %v125_v34, 0.0  ;;  %v164_v46 = vmax.f32 %v154_v35, 0.0 }
  0xb0   :  { %v127_v32 = vpop.f32.mrf.mxu0  ;;  %v156_v33 = vpop.f32.mrf.mxu1 }
  0xb1   :  { %v128_v36 = vadd.f32 %v127_v32, %v77_v26  ;;  %v157_v37 = vadd.f32 %v156_v33, %v77_v26  ;;  %v276_v26 = vpop.permute.xlu2 %275  ;;  %v266_v32 = vpop.permute.xlu1 %265 }
  0xb3   :  { %v165_v41 = vmax.f32 %v128_v36, 0.0  ;;  %v166_v42 = vmax.f32 %v157_v37, 0.0 }
  0xb5   :  { %188 = vmatpush.msra.mxu2 %v165_v41  ;;  %208 = vmatpush.msra.mxu3 %v166_v42 }
  0xb7   :  { %189 = vmatpush.msra.mxu2 %v163_v45  ;;  %209 = vmatpush.msra.mxu3 %v164_v46 }
  0xb9   :  { %190 = vmatpush.msra.mxu2 %v161_v47  ;;  %210 = vmatpush.msra.mxu3 %v162_v48  ;;  %v261_v37 = vpop.permute.xlu2 %260 }
  0xbb   :  { %191 = vmatpush.msra.mxu2 %v159_v49  ;;  %211 = vmatpush.msra.mxu3 %v160_v50 }
  0xbc   :  { %456 = vmatmul.msk.f32.vlgmr.msra.gmra.mxu2 %vm172_vm2, %v645_v51  ;;  %457 = vmatmul.msk.f32.vlgmr.msra.gmra.mxu3 %vm172_vm2, %v645_v51 }
 0x13f   :  { %v193_v53 = vpop.f32.mrf.mxu2  ;;  %v213_v54 = vpop.f32.mrf.mxu3 }
 0x140   :  { %v214_v55 = vadd.f32 %v213_v54, %v651_v52  ;;  %v194_v56 = vadd.f32 %v193_v53, %v651_v52 }
 0x142   :  { %v218_v57 = vrot.slane %v214_v55, 4 }
 0x144   :  { %v219_v58 = vsel %vm96_vm0, %v194_v56, %v218_v57 }
 0x145   :  { %v221_v59 = vsub.f32 %v580_v4, %v219_v58 }
 0x147   :  { %v222_v0 = vmul.f32 %v221_v59, %v221_v59 }
 0x149   :  { %224 = vst [vmem:[#allocation1] ss:$2 sm:$0xff] %v222_v0 }
 0x150   :  { %v225_v5 = vld.sshfl [vmem:[#allocation1] sm:$0xff pattern:$0x75316420]  ;;  %v226_v6 = vld.sshfl [vmem:[#allocation1 + $0x8] sm:$0xff pattern:$0x75316420] }
 0x151   :  { %v229_v4 = vsel %vm96_vm0, %v225_v5, 0.0  ;;  %v230_v7 = vsel %vm96_vm0, %v226_v6, 0.0  ;;  %279 = vst [vmem:[#allocation1] ss:$2 sm:$0xff] %v252_v3 }
 0x152   :  { %v231_v8 = vadd.f32 %v230_v7, %v229_v4 }
 0x154   :  { %232 = vadd.xlane.f32.xlu0 %v231_v8 }
 0x158   :  { %v280_v9 = vld.sshfl [vmem:[#allocation1] sm:$0xff pattern:$0x75316420]  ;;  %v281_v10 = vld.sshfl [vmem:[#allocation1 + $0x8] sm:$0xff pattern:$0x75316420] }
 0x159   :  { %466 = vmatpush.msk.msrb.mxu2 %vm96_vm0, %v280_v9  ;;  %471 = vmatpush.msk.msrb.mxu3 %vm96_vm0, %v281_v10 }
 0x15a   :  { %467 = vmatmul.msk.f32.vlgmr.msrb.gmra.mxu2 %vm83_vm1, %v598_v14  ;;  %472 = vmatmul.msk.f32.vlgmr.msrb.gmra.mxu3 %vm83_vm1, %v598_v14 }
 0x162   :  { %468 = vmatmul.msk.f32.gmra.mxu2 %vm83_vm1, %v609_v17  ;;  %473 = vmatmul.msk.f32.gmra.mxu3 %vm83_vm1, %v609_v17 }
 0x16a   :  { %469 = vmatmul.msk.f32.gmra.mxu2 %vm83_vm1, %v618_v18  ;;  %474 = vmatmul.msk.f32.gmra.mxu3 %vm83_vm1, %v618_v18 }
 0x172   :  { %470 = vmatmul.msk.f32.gmra.mxu2 %vm83_vm1, %v627_v19  ;;  %475 = vmatmul.msk.f32.gmra.mxu3 %vm83_vm1, %v627_v19 }
 0x1c7   :  { %v233_v12 = vpop.xlane.xlu0 %232 }
 0x1c8   :  { %v234_v13 = vrot.slane %v233_v12, 4 }
 0x1ca   :  { %v235_v14 = vadd.f32 %v234_v13, %v233_v12 }
 0x1cc   :  { %v236_v15 = vrot.slane %v235_v14, 2 }
 0x1ce   :  { %v237_v16 = vadd.f32 %v236_v15, %v235_v14 }
 0x1d0   :  { %v238_v20 = vrot.slane %v237_v16, 1 }
 0x1d2   :  { %v239_v17 = vadd.f32 %v238_v20, %v237_v16 }
 0x1d4   :  { %478 = vpush %v239_v17 }
 0x1dd   :  { %v303_v21 = vpop.f32.mrf.mxu2  ;;  %v332_v22 = vpop.f32.mrf.mxu3 }
 0x1de   :  { %v304_v38 = vadd.f32 %v303_v21, %v261_v37  ;;  %v333_v39 = vadd.f32 %v332_v22, %v261_v37 }
 0x1e0   :  { %v344_v44 = vmax.f32 %v304_v38, 0.0  ;;  %v345_v45 = vmax.f32 %v333_v39, 0.0 }
 0x1e5   :  { %v306_v23 = vpop.f32.mrf.mxu2  ;;  %v335_v24 = vpop.f32.mrf.mxu3 }
 0x1e6   :  { %v307_v33 = vadd.f32 %v306_v23, %v266_v32  ;;  %v336_v34 = vadd.f32 %v335_v24, %v266_v32 }
 0x1e8   :  { %v346_v42 = vmax.f32 %v307_v33, 0.0  ;;  %v347_v43 = vmax.f32 %v336_v34, 0.0 }
 0x1ed   :  { %v309_v18 = vpop.f32.mrf.mxu2  ;;  %v338_v25 = vpop.f32.mrf.mxu3 }
 0x1ee   :  { %v310_v29 = vadd.f32 %v309_v18, %v271_v11  ;;  %v339_v19 = vadd.f32 %v338_v25, %v271_v11 }
 0x1f0   :  { %v348_v40 = vmax.f32 %v310_v29, 0.0  ;;  %v349_v41 = vmax.f32 %v339_v19, 0.0 }
 0x1f5   :  { %v312_v27 = vpop.f32.mrf.mxu2  ;;  %v341_v28 = vpop.f32.mrf.mxu3 }
 0x1f6   :  { %v313_v30 = vadd.f32 %v312_v27, %v276_v26  ;;  %v342_v31 = vadd.f32 %v341_v28, %v276_v26 }
 0x1f8   :  { %v350_v35 = vmax.f32 %v313_v30, 0.0  ;;  %v351_v36 = vmax.f32 %v342_v31, 0.0 }
 0x1fa   :  { %364 = vmatpush.msrb.mxu0 %v350_v35  ;;  %384 = vmatpush.msrb.mxu1 %v351_v36 }
 0x1fc   :  { %365 = vmatpush.msrb.mxu0 %v348_v40  ;;  %385 = vmatpush.msrb.mxu1 %v349_v41 }
 0x1fe   :  { %366 = vmatpush.msrb.mxu0 %v346_v42  ;;  %386 = vmatpush.msrb.mxu1 %v347_v43 }
 0x200   :  { %367 = vmatpush.msrb.mxu0 %v344_v44  ;;  %387 = vmatpush.msrb.mxu1 %v345_v45 }
 0x201   :  { %476 = vmatmul.msk.f32.vlgmr.msrb.gmra.mxu0 %vm172_vm2, %v645_v51  ;;  %477 = vmatmul.msk.f32.vlgmr.msrb.gmra.mxu1 %vm172_vm2, %v645_v51 }
 0x205   :  { %s479_s1 = spop %478 }
 0x27e   :  { %v369_v46 = vpop.f32.mrf.mxu0  ;;  %v389_v47 = vpop.f32.mrf.mxu1 }
 0x27f   :  { %v390_v48 = vadd.f32 %v389_v47, %v651_v52  ;;  %v370_v49 = vadd.f32 %v369_v46, %v651_v52  ;;  %v420_v52 = vsub.f32 1.0, %v419_v63 }
 0x281   :  { %v394_v50 = vrot.slane %v390_v48, 4  ;;  %v421_v3 = vmul.f32 %v492_v62, %v420_v52 }
 0x283   :  { %v395_v53 = vsel %vm96_vm0, %v370_v49, %v394_v50  ;;  %v422_v6 = vadd.f32 %v492_v62, %v421_v3 }
 0x284   :  { %v397_v54 = vsub.f32 %v663_v61, %v395_v53 }
 0x285   :  { %v424_v8 = vsel %vm423_vm3, %v492_v62, %v422_v6 }
 0x286   :  { %v398_v55 = vmul.f32 %v397_v54, %v397_v54 }
 0x288   :  { %400 = vst [vmem:[#allocation1] ss:$2 sm:$0xff] %v398_v55 }
 0x28f   :  { %v401_v56 = vld.sshfl [vmem:[#allocation1] sm:$0xff pattern:$0x75316420]  ;;  %v402_v57 = vld.sshfl [vmem:[#allocation1 + $0x8] sm:$0xff pattern:$0x75316420] }
 0x290   :  { %v405_v58 = vsel %vm96_vm0, %v401_v56, 0.0  ;;  %v406_v59 = vsel %vm96_vm0, %v402_v57, 0.0 }
 0x291   :  { %v407_v51 = vadd.f32 %v406_v59, %v405_v58 }
 0x293   :  { %408 = vadd.xlane.f32.xlu1 %v407_v51 }
 0x306   :  { %v409_v0 = vpop.xlane.xlu1 %408 }
 0x307   :  { %v410_v1 = vrot.slane %v409_v0, 4 }
 0x309   :  { %v411_v2 = vadd.f32 %v410_v1, %v409_v0 }
 0x30b   :  { %v412_v61 = vrot.slane %v411_v2, 2 }
 0x30d   :  { %v413_v5 = vadd.f32 %v412_v61, %v411_v2 }
 0x30f   :  { %v414_v4 = vrot.slane %v413_v5, 1 }
 0x311   :  { %v415_v7 = vadd.f32 %v414_v4, %v413_v5 }
 0x313   :  { %480 = vpush %v415_v7 }
 0x314   :  { %482 = vpush %v424_v8 }
 0x344   :  { %s481_s18 = spop %480 }
 0x345   :  { %s417_s19 = sadd.f32 %s481_s18, %s479_s1  ;;  %s483_s20 = spop %482 }
 0x347   :  { %s426_s21 = smul.f32 %s483_s20, %s417_s19 }
 0x349   :  { %428 = sst [smem:[#allocation5]] %s426_s21 }
 0x34a   :  { %437 = dma.smem_to_hbm %s524_s22, 16, %s435_s17, [#allocation3]  }
 0x34b   :  { %519 = dma.done.wait [#allocation3], 16  }
 0x34c   :  { %520 = vsyncadd [#allocation3], 4294967280 }
 0x34d   :  { %442 = sfence }
 0x34e   :  { %443 = vsyncpa [#allocation3], 1 }
 0x34f   :  { %444 = vsyncpa [#allocation4], 1 }

</bundles_post_ra>
